<compile_context>
chip_gen: v5e
topology: v5e:2x2
jax: 0.10.0
libtpu: 0.0.40
codegen_flags: <defaults>
</compile_context>

<pallas_src>
import functools

import jax
import jax.numpy as jnp
from jax.experimental import pallas as pl
from jax.experimental.pallas import tpu as pltpu

HIDDEN = 128
LANE = 128
SUBLANE = 8
# Below this batch, XLA-fused MLP beats any custom call on every generation.
SMALL_BATCH_THRESHOLD = 128
# Above this batch, force >= 2 grid tiles so v7x's two TensorCores both work.
MEGACORE_SPLIT_THRESHOLD = 512


def _round_up(x, m):
    return (x + m - 1) // m * m


def dqn_kernel(x_ref, w1_ref, b1_ref, w2_ref, b2_ref, w3_ref, b3_ref, o_ref):
    # One batch tile of the 3-layer MLP: three MXU matmuls (bf16 in, f32 acc)
    # with f32 bias-add / ReLU on the VPU.  Weights are resident in VMEM.
    x = x_ref[...].astype(w1_ref.dtype)  # f32 -> bf16 cast fused into the kernel

    h1 = jnp.dot(x, w1_ref[...], preferred_element_type=jnp.float32) + b1_ref[...]
    h1 = jnp.maximum(h1, 0.0).astype(w2_ref.dtype)

    h2 = jnp.dot(h1, w2_ref[...], preferred_element_type=jnp.float32) + b2_ref[...]
    h2 = jnp.maximum(h2, 0.0).astype(w3_ref.dtype)

    q = jnp.dot(h2, w3_ref[...], preferred_element_type=jnp.float32) + b3_ref[...]
    # Fused column-select: store only the real action columns (out_dim wide),
    # not the 128-lane padded slab.  This is the dominant-traffic fix.
    o_ref[...] = q[:, : o_ref.shape[-1]].astype(o_ref.dtype)


@functools.partial(jax.jit, static_argnums=(2,), static_argnames=("block_m", "out_dtype"))
def dqn_forward_pallas(x, params, out_dim, *, block_m=1024, out_dtype=jnp.bfloat16):
    """x: (batch, input_dim) f32.  params: padded bf16 weights / f32 biases."""
    w1, b1, w2, b2, w3, b3 = params
    batch, in_dim = x.shape
    k_pad = w1.shape[0]   # input_dim rounded up to a sublane multiple (8)
    n_pad = w3.shape[1]   # layer-3 weights padded to 128 cols (MXU-clean matmul)

    # --- batch tiling --------------------------------------------------------
    # Big tiles amortize the ~0.35 us per-grid-step overhead.  Choose the tile
    # so batch-padding waste stays < 8 rows per tile, and force >= 2 tiles for
    # large batches so v7x's two TensorCores both get grid tiles.
    block_m = max(SUBLANE, _round_up(block_m, SUBLANE))
    batch_aligned = _round_up(batch, SUBLANE)
    n_tiles = pl.cdiv(batch_aligned, block_m)
    if batch_aligned >= MEGACORE_SPLIT_THRESHOLD:
        n_tiles = max(n_tiles, 2)
    tm = _round_up(pl.cdiv(batch_aligned, n_tiles), SUBLANE)
    padded_batch = tm * n_tiles

    # Single tiny wrapper-side pad (rows to the tile grid, features to the
    # sublane-aligned K); the f32->bf16 cast happens inside the kernel.
    if padded_batch != batch or k_pad != in_dim:
        x = jnp.pad(x, ((0, padded_batch - batch), (0, k_pad - in_dim)))

    out = pl.pallas_call(
        dqn_kernel,
        out_shape=jax.ShapeDtypeStruct((padded_batch, out_dim), out_dtype),
        grid_spec=pltpu.PrefetchScalarGridSpec(
            num_scalar_prefetch=0,
            grid=(n_tiles,),
            in_specs=[
                # Streamed over the batch grid:
                pl.BlockSpec((tm, k_pad), lambda i: (i, 0)),
                # Weights / biases: constant block index -> stay resident in
                # VMEM (~66 KB bf16 total; double-buffer duplication is
                # negligible, so no pipeline_mode override needed).
                pl.BlockSpec((k_pad, HIDDEN), lambda i: (0, 0)),
                pl.BlockSpec((1, HIDDEN), lambda i: (0, 0)),
                pl.BlockSpec((HIDDEN, HIDDEN), lambda i: (0, 0)),
                pl.BlockSpec((1, HIDDEN), lambda i: (0, 0)),
                pl.BlockSpec((HIDDEN, n_pad), lambda i: (0, 0)),
                pl.BlockSpec((1, n_pad), lambda i: (0, 0)),
            ],
            # Narrow, unpadded-column output: last dim equals the full array
            # dim, so the block is legal; HBM writeback is ~4-8 B/row.
            out_specs=pl.BlockSpec((tm, out_dim), lambda i: (i, 0)),
        ),
        compiler_params=pltpu.CompilerParams(
            dimension_semantics=(pltpu.PARALLEL,),  # shard batch tiles across TCs (v7x)
        ),
    )(x, w1, b1, w2, b2, w3, b3)

    # Row un-pad only (at most a few garbage rows at ~4-8 B/row); the column
    # select is already fused into the kernel store.
    return out if padded_batch == batch else out[:batch]


def reference_forward(x, params, out_dim, out_dtype=jnp.bfloat16):
    """Pure-JAX reference replicating the kernel's exact dtypes/padding."""
    w1, b1, w2, b2, w3, b3 = params
    k_pad = w1.shape[0]
    xp = jnp.pad(x, ((0, 0), (0, k_pad - x.shape[1]))).astype(w1.dtype)
    h1 = jnp.maximum(jnp.dot(xp, w1, preferred_element_type=jnp.float32) + b1, 0.0)
    h1 = h1.astype(w2.dtype)
    h2 = jnp.maximum(jnp.dot(h1, w2, preferred_element_type=jnp.float32) + b2, 0.0)
    h2 = h2.astype(w3.dtype)
    q = jnp.dot(h2, w3, preferred_element_type=jnp.float32) + b3
    return q[:, :out_dim].astype(out_dtype)


@functools.partial(jax.jit, static_argnums=(2,), static_argnames=("out_dtype",))
def dqn_forward_xla(x, params, out_dim, *, out_dtype=jnp.bfloat16):
    return reference_forward(x, params, out_dim, out_dtype=out_dtype)


def dqn_forward(x, params, out_dim, *, block_m=1024, out_dtype=jnp.bfloat16):
    """Dispatcher: XLA-fused MLP for acting-sized batches, Pallas for training."""
    if x.shape[0] < SMALL_BATCH_THRESHOLD:
        return dqn_forward_xla(x, params, out_dim, out_dtype=out_dtype)
    return dqn_forward_pallas(x, params, out_dim, block_m=block_m, out_dtype=out_dtype)


def init_params(key, input_dim, output_dim, *, compute_dtype=jnp.bfloat16):
    """PyTorch-like fan-in uniform init; returns padded kernel-ready params."""
    k1, k2, k3, k4, k5, k6 = jax.random.split(key, 6)

    def u(k, shape, fan_in):
        bound = 1.0 / jnp.sqrt(jnp.float32(fan_in))
        return jax.random.uniform(k, shape, jnp.float32, -bound, bound)

    k_pad = _round_up(input_dim, SUBLANE)
    n_pad = _round_up(output_dim, LANE)

    w1 = u(k1, (input_dim, HIDDEN), input_dim)
    b1 = u(k2, (1, HIDDEN), input_dim)
    w2 = u(k3, (HIDDEN, HIDDEN), HIDDEN)
    b2 = u(k4, (1, HIDDEN), HIDDEN)
    w3 = u(k5, (HIDDEN, output_dim), HIDDEN)
    b3 = u(k6, (1, output_dim), HIDDEN)

    # Zero-pad: K of layer 1 to a sublane multiple, N of layer 3 to a full lane
    # width for an MXU-clean final matmul (the store only keeps output_dim cols).
    w1p = jnp.zeros((k_pad, HIDDEN), jnp.float32).at[:input_dim, :].set(w1)
    w3p = jnp.zeros((HIDDEN, n_pad), jnp.float32).at[:, :output_dim].set(w3)
    b3p = jnp.zeros((1, n_pad), jnp.float32).at[:, :output_dim].set(b3)

    # Weights in bf16 for the MXU; biases stay f32 (f32 bias-add / ReLU on VPU).
    return (
        w1p.astype(compute_dtype), b1,
        w2.astype(compute_dtype), b2,
        w3p.astype(compute_dtype), b3p,
    )


def _check(got, want, shape):
    assert got.shape == shape, (got.shape, shape)
    assert jnp.allclose(got.astype(jnp.float32), want.astype(jnp.float32),
                        atol=2e-2, rtol=2e-2), "mismatch"


if __name__ == "__main__":
    key = jax.random.PRNGKey(0)
    k_x, k_x2, k_x3, k_p = jax.random.split(key, 4)

    # Blackjack-like DQN: small state vector, 2 actions (hit / stand).
    input_dim, output_dim = 4, 2
    params = init_params(k_p, input_dim, output_dim)

    # 1) Acting-sized batch: exercise the Pallas kernel directly (single tiny
    #    tile), plus the auto-dispatcher (which takes the XLA path here).
    x_small = jax.random.normal(k_x, (8, input_dim), jnp.float32)
    out_small = jax.block_until_ready(dqn_forward_pallas(x_small, params, output_dim))
    ref_small = reference_forward(x_small, params, output_dim)
    _check(out_small, ref_small, (8, output_dim))
    out_auto = jax.block_until_ready(dqn_forward(x_small, params, output_dim))
    _check(out_auto, ref_small, (8, output_dim))

    # 2) Replay-buffer-sized batch: single large tile (no batch padding).
    x_train = jax.random.normal(k_x2, (256, input_dim), jnp.float32)
    out_train = jax.block_until_ready(dqn_forward(x_train, params, output_dim))
    ref_train = reference_forward(x_train, params, output_dim)
    _check(out_train, ref_train, (256, output_dim))

    # 3) Larger ragged batch: exercises the >=2-tile megacore split (600 >= 512
    #    -> 2 tiles of 304 rows) and the minimal row padding / un-pad path.
    x_big = jax.random.normal(k_x3, (600, input_dim), jnp.float32)
    out_big = jax.block_until_ready(dqn_forward(x_big, params, output_dim))
    ref_big = reference_forward(x_big, params, output_dim)
    _check(out_big, ref_big, (600, output_dim))

    print("KERNEL_OK")
</pallas_src>

<mosaic_0001>
module attributes {stable_mosaic.version = 11 : i64} {
  func.func @dqn_kernel(%arg0: i32, %arg1: memref<8x8xf32, #tpu.memory_space<vmem>>, %arg2: memref<8x128xbf16, #tpu.memory_space<vmem>>, %arg3: memref<1x128xf32, #tpu.memory_space<vmem>>, %arg4: memref<128x128xbf16, #tpu.memory_space<vmem>>, %arg5: memref<1x128xf32, #tpu.memory_space<vmem>>, %arg6: memref<128x128xbf16, #tpu.memory_space<vmem>>, %arg7: memref<1x128xf32, #tpu.memory_space<vmem>>, %arg8: memref<8x2xbf16, #tpu.memory_space<vmem>>) attributes {dimension_semantics = [#tpu.dimension_semantics<parallel>], iteration_bounds = array<i64: 1>, scalar_prefetch = 0 : i64, scratch_operands = 0 : i64, tpu.core_type = #tpu.core_type<tc>, window_params = [{transform_indices = @transform_0, window_bounds = array<i64: 8, 8>}, {pipeline_mode = #tpu.pipeline_mode<synchronous>, transform_indices = @transform_1, window_bounds = array<i64: 8, 128>}, {pipeline_mode = #tpu.pipeline_mode<synchronous>, transform_indices = @transform_2, window_bounds = array<i64: 1, 128>}, {pipeline_mode = #tpu.pipeline_mode<synchronous>, transform_indices = @transform_3, window_bounds = array<i64: 128, 128>}, {pipeline_mode = #tpu.pipeline_mode<synchronous>, transform_indices = @transform_4, window_bounds = array<i64: 1, 128>}, {pipeline_mode = #tpu.pipeline_mode<synchronous>, transform_indices = @transform_5, window_bounds = array<i64: 128, 128>}, {pipeline_mode = #tpu.pipeline_mode<synchronous>, transform_indices = @transform_6, window_bounds = array<i64: 1, 128>}, {transform_indices = @transform_7, window_bounds = array<i64: 8, 2>}]} {
    %c0 = arith.constant 0 : index
    %c0_0 = arith.constant 0 : index
    %0 = vector.load %arg1[%c0, %c0_0] : memref<8x8xf32, #tpu.memory_space<vmem>>, vector<8x8xf32>
    %1 = arith.truncf %0 : vector<8x8xf32> to vector<8x8xbf16>
    %c0_1 = arith.constant 0 : index
    %c0_2 = arith.constant 0 : index
    %2 = vector.load %arg2[%c0_1, %c0_2] : memref<8x128xbf16, #tpu.memory_space<vmem>>, vector<8x128xbf16>
    %cst = arith.constant dense<0.000000e+00> : vector<8x128xf32>
    %3 = tpu.matmul %1, %2, %cst {dimension_numbers = #tpu.dot_dimension_numbers<[1], [0], [0], [1], [0, 0, 1, 1], [], []>} : vector<8x8xbf16>, vector<8x128xbf16>, vector<8x128xf32> -> vector<8x128xf32>
    %c0_3 = arith.constant 0 : index
    %c0_4 = arith.constant 0 : index
    %4 = vector.load %arg3[%c0_3, %c0_4] : memref<1x128xf32, #tpu.memory_space<vmem>>, vector<1x128xf32>
    %5 = vector.broadcast %4 : vector<1x128xf32> to vector<8x128xf32>
    %6 = arith.addf %3, %5 : vector<8x128xf32>
    %cst_5 = arith.constant 0.000000e+00 : f32
    %7 = vector.broadcast %cst_5 : f32 to vector<8x128xf32>
    %8 = arith.maximumf %6, %7 : vector<8x128xf32>
    %9 = arith.truncf %8 : vector<8x128xf32> to vector<8x128xbf16>
    %c0_6 = arith.constant 0 : index
    %c0_7 = arith.constant 0 : index
    %10 = vector.load %arg4[%c0_6, %c0_7] : memref<128x128xbf16, #tpu.memory_space<vmem>>, vector<128x128xbf16>
    %cst_8 = arith.constant dense<0.000000e+00> : vector<8x128xf32>
    %11 = tpu.matmul %9, %10, %cst_8 {dimension_numbers = #tpu.dot_dimension_numbers<[1], [0], [0], [1], [0, 0, 1, 1], [], []>} : vector<8x128xbf16>, vector<128x128xbf16>, vector<8x128xf32> -> vector<8x128xf32>
    %c0_9 = arith.constant 0 : index
    %c0_10 = arith.constant 0 : index
    %12 = vector.load %arg5[%c0_9, %c0_10] : memref<1x128xf32, #tpu.memory_space<vmem>>, vector<1x128xf32>
    %13 = vector.broadcast %12 : vector<1x128xf32> to vector<8x128xf32>
    %14 = arith.addf %11, %13 : vector<8x128xf32>
    %cst_11 = arith.constant 0.000000e+00 : f32
    %15 = vector.broadcast %cst_11 : f32 to vector<8x128xf32>
    %16 = arith.maximumf %14, %15 : vector<8x128xf32>
    %17 = arith.truncf %16 : vector<8x128xf32> to vector<8x128xbf16>
    %c0_12 = arith.constant 0 : index
    %c0_13 = arith.constant 0 : index
    %18 = vector.load %arg6[%c0_12, %c0_13] : memref<128x128xbf16, #tpu.memory_space<vmem>>, vector<128x128xbf16>
    %cst_14 = arith.constant dense<0.000000e+00> : vector<8x128xf32>
    %19 = tpu.matmul %17, %18, %cst_14 {dimension_numbers = #tpu.dot_dimension_numbers<[1], [0], [0], [1], [0, 0, 1, 1], [], []>} : vector<8x128xbf16>, vector<128x128xbf16>, vector<8x128xf32> -> vector<8x128xf32>
    %c0_15 = arith.constant 0 : index
    %c0_16 = arith.constant 0 : index
    %20 = vector.load %arg7[%c0_15, %c0_16] : memref<1x128xf32, #tpu.memory_space<vmem>>, vector<1x128xf32>
    %21 = vector.broadcast %20 : vector<1x128xf32> to vector<8x128xf32>
    %22 = arith.addf %19, %21 : vector<8x128xf32>
    %23 = vector.extract_strided_slice %22 {offsets = [0, 0], sizes = [8, 2], strides = [1, 1]} : vector<8x128xf32> to vector<8x2xf32>
    %24 = arith.truncf %23 : vector<8x2xf32> to vector<8x2xbf16>
    %c0_17 = arith.constant 0 : index
    %c0_18 = arith.constant 0 : index
    %25 = vector.load %arg8[%c0_17, %c0_18] : memref<8x2xbf16, #tpu.memory_space<vmem>>, vector<8x2xbf16>
    tpu.vector_store %arg8[%c0_17, %c0_18], %24 {strides = array<i32>} : memref<8x2xbf16, #tpu.memory_space<vmem>>, vector<8x2xbf16>,
    return
  }
  func.func @transform_0(%arg0: i32) -> (i32, i32) {
    %c0_i32 = arith.constant 0 : i32
    %c0_i32_0 = arith.constant 0 : i32
    return %arg0, %c0_i32 : i32, i32
  }
  func.func @transform_1(%arg0: i32) -> (i32, i32) {
    %c0_i32 = arith.constant 0 : i32
    %c0_i32_0 = arith.constant 0 : i32
    %c0_i32_1 = arith.constant 0 : i32
    return %c0_i32, %c0_i32_0 : i32, i32
  }
  func.func @transform_2(%arg0: i32) -> (i32, i32) {
    %c0_i32 = arith.constant 0 : i32
    %c0_i32_0 = arith.constant 0 : i32
    %c0_i32_1 = arith.constant 0 : i32
    return %c0_i32, %c0_i32_0 : i32, i32
  }
  func.func @transform_3(%arg0: i32) -> (i32, i32) {
    %c0_i32 = arith.constant 0 : i32
    %c0_i32_0 = arith.constant 0 : i32
    %c0_i32_1 = arith.constant 0 : i32
    return %c0_i32, %c0_i32_0 : i32, i32
  }
  func.func @transform_4(%arg0: i32) -> (i32, i32) {
    %c0_i32 = arith.constant 0 : i32
    %c0_i32_0 = arith.constant 0 : i32
    %c0_i32_1 = arith.constant 0 : i32
    return %c0_i32, %c0_i32_0 : i32, i32
  }
  func.func @transform_5(%arg0: i32) -> (i32, i32) {
    %c0_i32 = arith.constant 0 : i32
    %c0_i32_0 = arith.constant 0 : i32
    %c0_i32_1 = arith.constant 0 : i32
    return %c0_i32, %c0_i32_0 : i32, i32
  }
  func.func @transform_6(%arg0: i32) -> (i32, i32) {
    %c0_i32 = arith.constant 0 : i32
    %c0_i32_0 = arith.constant 0 : i32
    %c0_i32_1 = arith.constant 0 : i32
    return %c0_i32, %c0_i32_0 : i32, i32
  }
  func.func @transform_7(%arg0: i32) -> (i32, i32) {
    %c0_i32 = arith.constant 0 : i32
    %c0_i32_0 = arith.constant 0 : i32
    return %arg0, %c0_i32 : i32, i32
  }
}

</mosaic_0001>

<bundles_post_ra>
// kernel: dqn_forward_pallas.1
= control target key start
LH: loop header
LB: loop body
LE: loop exit
PB: predicated region body
PF: predicated region fallthrough
CT: control target
= control target key end

     0   :  { %12 = vsyncpa [#allocation3], 0  ;;  %s470_s0 = inlined_call_operand.vmem [shape: f32[8,8], index: 0, kind: input, shape index: {}]   ;;  %s471_s1 = inlined_call_operand.vmem [shape: bf16[8,128], index: 1, kind: input, shape index: {}]   ;;  %s472_s2 = inlined_call_operand.vmem [shape: f32[1,128], index: 2, kind: input, shape index: {}]   ;;  %s473_s3 = inlined_call_operand.hbm [shape: bf16[128,128], index: 3, kind: input, shape index: {}]   ;;  %s474_s4 = inlined_call_operand.vmem [shape: f32[1,128], index: 4, kind: input, shape index: {}]   ;;  %s475_s5 = inlined_call_operand.hbm [shape: bf16[128,128], index: 5, kind: input, shape index: {}]   ;;  %s476_s6 = inlined_call_operand.vmem [shape: f32[1,128], index: 6, kind: input, shape index: {}]   ;;  %s477_s7 = inlined_call_operand.vmem [shape: bf16[8,2], index: 7, kind: output, shape index: {}]  }
   0x1   :  { %s24_s26 = sshll.u32 %s473_s3, 4  ;;  %s25_s26 = int_to_ptr.hbm [resolvable:$true] %s24_s26 }
   0x2   :  { %13 = vsyncpa [#allocation5], 0  ;;  %s402_s27 = smov [#allocation2]   ;;  %s39_s8 = sshll.u32 %s475_s5, 4  ;;  %s40_s8 = int_to_ptr.hbm [resolvable:$true] %s39_s8 }
   0x3   :  { %s26_s28 = sshll.u32 %s402_s27, 4  ;;  %s403_s9 = smov 64   ;;  %s27_s28 = int_to_ptr.vmem [resolvable:$true] %s26_s28 }
   0x4   :  { %s404_s10 = smov 4   ;;  %s405_s11 = smov [#allocation4]  }
   0x5   :  { %32 = dma.hbm_to_vmem [thread:$0]  %s25_s26, 1024, %s27_s28, [#allocation3], %s403_s9, %s403_s9, %s404_s10  }
   0x6   :  { %s41_s12 = sshll.u32 %s405_s11, 4  ;;  %s42_s12 = int_to_ptr.vmem [resolvable:$true] %s41_s12 }
   0x7   :  { %47 = dma.hbm_to_vmem [thread:$0]  %s40_s8, 1024, %s42_s12, [#allocation5], %s403_s9, %s403_s9, %s404_s10  }
   0x8   :  { %398 = dma.done.wait [#allocation3], 1024  }
   0x9   :  { %399 = vsyncadd [#allocation3], 4294966272 }
   0xa   :  { %400 = dma.done.wait [#allocation5], 1024  }
   0xb   :  { %401 = vsyncadd [#allocation5], 4294966272  ;;  %vm70_vm0 = vcmask 1043456   ;;  %v61_v0 = vld [vmem:[%s471_s1] sm:$0xf]  ;;  %v334_v2 = vld [vmem:[#allocation2 + $0x38] sm:$0xff] }
   0xc   :  { %v59_v1 = vld [vmem:[%s470_s0] sm:$0xff]  ;;  %v72_v3 = vsel %vm70_vm0, %v61_v0, 0  ;;  %vm66_vm1 = vcmask 64512   ;;  %157 = vmatpush.bf16.msra.mxu1 %v334_v2  ;;  %v333_v5 = vld [vmem:[#allocation2 + $0x30] sm:$0xff]  ;;  %v332_v6 = vld [vmem:[#allocation2 + $0x28] sm:$0xff]  ;;  %vm254_vm2 = vcmask 11264  }
   0xd   :  { %v60_v4 = vpack.c.bf16 %v59_v1, %v59_v1  ;;  %81 = vmatpush.bf16.msra.mxu0 %v72_v3  ;;  %v331_v7 = vld [vmem:[#allocation2 + $0x20] sm:$0xff]  ;;  %v330_v8 = vld [vmem:[#allocation2 + $0x18] sm:$0xff]  ;;  %v329_v9 = vld [vmem:[#allocation2 + $0x10] sm:$0xff] }
   0xe   :  { %v328_v10 = vld [vmem:[#allocation2 + $0x8] sm:$0xff]  ;;  %v327_v11 = vld [vmem:[#allocation2] sm:$0xff]  ;;  %v342_v12 = vld [vmem:[#allocation4 + $0x38] sm:$0xff] }
   0xf   :  { %240 = vmatpush.bf16.msra.mxu2 %v342_v12  ;;  %v341_v13 = vld [vmem:[#allocation4 + $0x30] sm:$0xff]  ;;  %v340_v14 = vld [vmem:[#allocation4 + $0x28] sm:$0xff]  ;;  %v339_v15 = vld [vmem:[#allocation4 + $0x20] sm:$0xff] }
  0x10   :  { %262 = vmatmul.msk.bf16.vlgmr.msra.gmra.mxu0 %vm66_vm1, %v60_v4  ;;  %158 = vmatpush.bf16.msra.mxu1 %v333_v5  ;;  %v338_v16 = vld [vmem:[#allocation4 + $0x18] sm:$0xff]  ;;  %v337_v17 = vld [vmem:[#allocation4 + $0x10] sm:$0xff]  ;;  %v347_v18 = vld [vmem:[%s472_s2] ss:$0 sm:$0xff] }
  0x11   :  { %v336_v24 = vld [vmem:[#allocation4 + $0x8] sm:$0xff]  ;;  %v335_v25 = vld [vmem:[#allocation4] sm:$0xff] }
  0x12   :  { %v348_v26 = vld [vmem:[%s474_s4] ss:$0 sm:$0xff] }
  0x13   :  { %241 = vmatpush.bf16.msra.mxu2 %v341_v13  ;;  %v349_v32 = vld [vmem:[%s476_s6] ss:$0 sm:$0xff] }
  0x14   :  { %159 = vmatpush.bf16.msra.mxu1 %v332_v6 }
  0x17   :  { %242 = vmatpush.bf16.msra.mxu2 %v340_v14 }
  0x18   :  { %160 = vmatpush.bf16.msra.mxu1 %v331_v7 }
  0x1b   :  { %243 = vmatpush.bf16.msra.mxu2 %v339_v15 }
  0x1c   :  { %161 = vmatpush.bf16.msra.mxu1 %v330_v8 }
  0x1f   :  { %244 = vmatpush.bf16.msra.mxu2 %v338_v16 }
  0x20   :  { %162 = vmatpush.bf16.msra.mxu1 %v329_v9 }
  0x23   :  { %245 = vmatpush.bf16.msra.mxu2 %v337_v17 }
  0x24   :  { %163 = vmatpush.bf16.msra.mxu1 %v328_v10 }
  0x27   :  { %246 = vmatpush.bf16.msra.mxu2 %v336_v24 }
  0x28   :  { %164 = vmatpush.bf16.msra.mxu1 %v327_v11 }
  0x2b   :  { %247 = vmatpush.bf16.msra.mxu2 %v335_v25 }
  0x8d   :  { %v83_v19 = vpop.f32.mrf.mxu0 }
  0x8e   :  { %v84_v20 = vadd.f32 %v347_v18, %v83_v19 }
  0x90   :  { %v87_v21 = vmax.f32 %v84_v20, 0.0 }
  0x92   :  { %v88_v22 = vpack.c.bf16 %v87_v21, %v87_v21 }
  0x94   :  { %165 = vmatmul.bf16.vlgmr.msra.gmra.mxu1 %v88_v22 }
  0x95   :  { %v85_v23 = vpop.f32.mrf.mxu0 }
 0x111   :  { %v166_v27 = vpop.f32.mrf.mxu1 }
 0x112   :  { %v167_v28 = vadd.f32 %v348_v26, %v166_v27 }
 0x114   :  { %v170_v29 = vmax.f32 %v167_v28, 0.0 }
 0x116   :  { %v171_v30 = vpack.c.bf16 %v170_v29, %v170_v29 }
 0x118   :  { %248 = vmatmul.bf16.vlgmr.msra.gmra.mxu2 %v171_v30 }
 0x119   :  { %v168_v31 = vpop.f32.mrf.mxu1 }
 0x19b   :  { %v249_v33 = vpop.f32.mrf.mxu2 }
 0x19c   :  { %v250_v34 = vadd.f32 %v349_v32, %v249_v33 }
 0x19e   :  { %v253_v35 = vpack.c.bf16 %v250_v34, %v250_v34 }
 0x1a0   :  { %255 = vst.msk [vmem:[%s477_s7] sm:$0xf] %vm254_vm2, %v253_v35 }
 0x1a3   :  { %v251_v36 = vpop.f32.mrf.mxu2 }
 0x1a4   :  { %260 = vsyncpa [#allocation3], 1 }
 0x1a5   :  { %261 = vsyncpa [#allocation5], 1 }

</bundles_post_ra>
